<compile_context>
chip_gen: v7x
topology: tpu7x:2x2x1
jax: 0.10.0
libtpu: 0.0.40
codegen_flags: <defaults>
</compile_context>

<pallas_src>
import jax
import jax.numpy as jnp
from jax.experimental import pallas as pl
from jax.experimental.pallas import tpu as pltpu


def _to_rgb8_kernel(x_ref, o_ref):
    # y = clamp(x * 127.5 + 128, 0, 255), truncate to uint8 (matches torch .byte()).
    x = x_ref[...].astype(jnp.float32)
    y = jnp.clip(x * jnp.float32(127.5) + jnp.float32(128.0), 0.0, 255.0)
    # f32 -> i32 (truncate toward zero; values already clamped to [0,255]) -> u8.
    # Kept via an i32 intermediate rather than a direct f32->u8 cast: bit-exact
    # torch .byte() truncation and robust across Mosaic float->narrow-uint
    # lowering. Wall-clock neutral here (HBM-bound).
    o_ref[...] = y.astype(jnp.int32).astype(jnp.uint8)


def _clamp_kernel(x_ref, o_ref):
    # y = clamp(x, -1, 1) in the native dtype (-1/1 exactly representable);
    # the compiler upcasts on chips without native VPU support for the dtype.
    x = x_ref[...]
    o_ref[...] = jnp.clip(x, -1.0, 1.0).astype(o_ref.dtype)


def _choose_2d_view(total):
    """Pick a lane-dense (rows, lane) factorization of `total`, or None."""
    for lane in (1024, 512, 256, 128):
        if total % lane == 0:
            return total // lane, lane
    return None


def _choose_block_rows(rows, lane, itemsize, byte_budget, min_grid):
    """Block rows: ~byte_budget of input per block, multiple of 32, >= min_grid
    grid steps when rows allow, preferring a divisor of rows (no masked tail)."""
    target = max(32, byte_budget // (lane * itemsize))
    if rows >= min_grid * 32:
        target = min(target, max(32, rows // min_grid))
    target = min(target, rows)
    if target >= rows:
        return rows                       # one full-extent block (small input)
    target -= target % 32
    target = max(32, target)
    # Prefer a multiple-of-32 divisor of rows near the target -> unmasked tail.
    for cand in range(target, max(31, target - 8 * 32), -32):
        if rows % cand == 0:
            return cand
    return target


def to_output_rgb(x, rgb8output=True, *, block_byte_budget=8 << 20, min_grid=4):
    """x: float array (any shape, NCHW in the network). Mirrors ToOutputRGB.forward."""
    orig_shape = x.shape
    total = int(x.size)
    out_dtype = jnp.uint8 if rgb8output else x.dtype
    kernel = _to_rgb8_kernel if rgb8output else _clamp_kernel

    view = _choose_2d_view(total)
    if view is not None:
        rows, lane = view
        pad = 0
        x2 = x.reshape(rows, lane)
    else:
        # Pad the flat array to a multiple of 32*128 so every shape takes the
        # lane-dense tiled path (cheap XLA pad/slice around the kernel).
        lane = 128
        unit = 32 * lane
        padded_total = ((total + unit - 1) // unit) * unit
        pad = padded_total - total
        rows = padded_total // lane
        x2 = jnp.pad(x.reshape(-1), (0, pad)).reshape(rows, lane)

    in_itemsize = jnp.dtype(x2.dtype).itemsize
    out_itemsize = jnp.dtype(out_dtype).itemsize
    br = _choose_block_rows(rows, lane, in_itemsize, block_byte_budget, min_grid)
    block = (br, lane)
    grid = (pl.cdiv(rows, br),)

    # Double-buffered in + out blocks plus headroom; makes the larger tiles
    # compile under v5e's 16 MiB scoped-VMEM default, stays within v7x's 64 MiB.
    block_bytes = br * lane * (in_itemsize + out_itemsize)
    vmem_limit = int(min(64 << 20, max(32 << 20, 2 * block_bytes + (4 << 20))))

    bytes_accessed = x2.size * (in_itemsize + out_itemsize)
    out2 = pl.pallas_call(
        kernel,
        out_shape=jax.ShapeDtypeStruct(x2.shape, out_dtype),
        grid_spec=pl.GridSpec(
            grid=grid,
            in_specs=[pl.BlockSpec(block, lambda i: (i, 0))],
            out_specs=pl.BlockSpec(block, lambda i: (i, 0)),
        ),
        compiler_params=pltpu.CompilerParams(
            dimension_semantics=("parallel",),
            vmem_limit_bytes=vmem_limit,
        ),
        cost_estimate=pl.CostEstimate(
            flops=2 * total, transcendentals=0, bytes_accessed=int(bytes_accessed)
        ),
        # Clamp path: same shape/dtype in and out -> donate the input buffer.
        input_output_aliases=({} if rgb8output else {0: 0}),
    )(x2)

    out_flat = out2.reshape(-1)
    if pad:
        out_flat = out_flat[:total]
    return out_flat.reshape(orig_shape)


if __name__ == "__main__":
    key = jax.random.PRNGKey(0)
    N, C, H, W = 2, 3, 16, 16  # RGB image batch
    # Values spanning outside [-1, 1] so both clamps are exercised.
    x_f32 = jax.random.uniform(key, (N, C, H, W), minval=-1.5, maxval=1.5,
                               dtype=jnp.float32)

    # --- rgb8output=True branch: float32 -> uint8 ---
    out8 = jax.block_until_ready(to_output_rgb(x_f32, rgb8output=True))
    ref8 = jnp.clip(x_f32 * 127.5 + 128.0, 0.0, 255.0).astype(jnp.int32).astype(jnp.uint8)
    assert out8.shape == (N, C, H, W), out8.shape
    assert out8.dtype == jnp.uint8, out8.dtype
    assert bool(jnp.all(out8 == ref8))

    # --- rgb8output=False branch: clamp to [-1, 1], dtype preserved (fp16) ---
    x_f16 = x_f32.astype(jnp.float16)
    outc = jax.block_until_ready(to_output_rgb(x_f16, rgb8output=False))
    refc = jnp.clip(x_f16, -1.0, 1.0)
    assert outc.shape == (N, C, H, W), outc.shape
    assert outc.dtype == jnp.float16, outc.dtype
    assert bool(jnp.all(outc == refc))

    # --- padded path: total not divisible by 128 (both branches) ---
    x_odd = jax.random.uniform(jax.random.PRNGKey(1), (2, 3, 15, 15),
                               minval=-1.5, maxval=1.5, dtype=jnp.float32)
    out_odd8 = jax.block_until_ready(to_output_rgb(x_odd, rgb8output=True))
    ref_odd8 = jnp.clip(x_odd * 127.5 + 128.0, 0.0, 255.0).astype(jnp.int32).astype(jnp.uint8)
    assert out_odd8.shape == x_odd.shape and out_odd8.dtype == jnp.uint8
    assert bool(jnp.all(out_odd8 == ref_odd8))
    out_oddc = jax.block_until_ready(to_output_rgb(x_odd, rgb8output=False))
    assert bool(jnp.all(out_oddc == jnp.clip(x_odd, -1.0, 1.0)))

    # --- multi-step grid: tiny byte budget forces tiling + masked tail block ---
    x_big = jax.random.uniform(jax.random.PRNGKey(2), (4, 3, 64, 64),
                               minval=-1.5, maxval=1.5, dtype=jnp.float32)
    out_big = jax.block_until_ready(
        to_output_rgb(x_big, rgb8output=True, block_byte_budget=1 << 14))
    ref_big = jnp.clip(x_big * 127.5 + 128.0, 0.0, 255.0).astype(jnp.int32).astype(jnp.uint8)
    assert bool(jnp.all(out_big == ref_big))

    print("KERNEL_OK")
</pallas_src>

<mosaic_0001>
module attributes {stable_mosaic.version = 11 : i64} {
  func.func @_to_rgb8_kernel(%arg0: i32, %arg1: memref<3x512xf32, #tpu.memory_space<vmem>>, %arg2: memref<3x512xi8, #tpu.memory_space<vmem>>) attributes {dimension_semantics = [#tpu.dimension_semantics<parallel>], iteration_bounds = array<i64: 1>, scalar_prefetch = 0 : i64, scratch_operands = 0 : i64, tpu.core_type = #tpu.core_type<tc>, window_params = [{transform_indices = @transform_0, window_bounds = array<i64: 3, 512>}, {transform_indices = @transform_1, window_bounds = array<i64: 3, 512>}]} {
    %c0 = arith.constant 0 : index
    %c0_0 = arith.constant 0 : index
    %0 = vector.load %arg1[%c0, %c0_0] : memref<3x512xf32, #tpu.memory_space<vmem>>, vector<3x512xf32>
    %cst = arith.constant 1.275000e+02 : f32
    %1 = vector.broadcast %cst : f32 to vector<3x512xf32>
    %2 = arith.mulf %0, %1 : vector<3x512xf32>
    %cst_1 = arith.constant 1.280000e+02 : f32
    %3 = vector.broadcast %cst_1 : f32 to vector<3x512xf32>
    %4 = arith.addf %2, %3 : vector<3x512xf32>
    %cst_2 = arith.constant 0.000000e+00 : f32
    %cst_3 = arith.constant 2.550000e+02 : f32
    %5 = vector.broadcast %cst_2 : f32 to vector<3x512xf32>
    %6 = arith.maximumf %5, %4 : vector<3x512xf32>
    %7 = vector.broadcast %cst_3 : f32 to vector<3x512xf32>
    %8 = arith.minimumf %7, %6 : vector<3x512xf32>
    %9 = arith.fptosi %8 : vector<3x512xf32> to vector<3x512xi32>
    %10 = arith.trunci %9 : vector<3x512xi32> to vector<3x512xi8>
    %c0_4 = arith.constant 0 : index
    %c0_5 = arith.constant 0 : index
    %11 = vector.load %arg2[%c0_4, %c0_5] : memref<3x512xi8, #tpu.memory_space<vmem>>, vector<3x512xi8>
    tpu.vector_store %arg2[%c0_4, %c0_5], %10 {strides = array<i32>} : memref<3x512xi8, #tpu.memory_space<vmem>>, vector<3x512xi8>,
    return
  }
  func.func @transform_0(%arg0: i32) -> (i32, i32) {
    %c0_i32 = arith.constant 0 : i32
    %c0_i32_0 = arith.constant 0 : i32
    return %arg0, %c0_i32 : i32, i32
  }
  func.func @transform_1(%arg0: i32) -> (i32, i32) {
    %c0_i32 = arith.constant 0 : i32
    %c0_i32_0 = arith.constant 0 : i32
    return %arg0, %c0_i32 : i32, i32
  }
}

</mosaic_0001>

<bundles_post_ra>
// kernel: tpu_custom_call.1
= control target key start
LH: loop header
LB: loop body
LE: loop exit
PB: predicated region body
PF: predicated region fallthrough
CT: control target
= control target key end

     0   :  { %6 = vsyncpa [#allocation3], 0  ;;  %s206_s0 = inlined_call_operand.hbm [shape: f32[3,512], index: 0, kind: input, shape index: {}]   ;;  %s207_s1 = inlined_call_operand.hbm [shape: u8[3,512], index: 1, kind: output, shape index: {}]  }
   0x1   :  { %7 = vsyncpa [#allocation4], 0  ;;  %s157_s6 = smov [#allocation2]   ;;  %s109_s10 = scalar_lea.hbm %s206_s0, 256 }
   0x2   :  { %s14_s7 = sshll.u32 %s157_s6, 4  ;;  %p110_p0 = scmp.ne.s32.totalorder %s206_s0, %s109_s10  ;;  %s15_s7 = int_to_ptr.vmem [resolvable:$true] %s14_s7 }
   0x3   :  { %p113_p1 = scmp.lt.u32.totalorder %s109_s10, %s206_s0 }
   0x5   :  { %p115_p2 = pnand %p113_p1, %p110_p0 }
   0x7   :  { %118 = shalt.err (!%p115_p2)
}
   0x8   :  { %s119_s15 = scalar_lea.vmem %s15_s7, 256  ;;  %p124_p4 = scmp.lt.s32.totalorder %s15_s7, %s15_s7 }
   0x9   :  { %p120_p3 = scmp.ne.s32.totalorder %s15_s7, %s119_s15  ;;  %p125_p5 = scmp.lt.s32.totalorder %s119_s15, %s119_s15 }
   0xb   :  { %p126_p6 = por %p125_p5, %p124_p4 }
   0xd   :  { %p127_p7 = pnand %p126_p6, %p120_p3 }
   0xf   :  { %130 = shalt.err (!%p127_p7)
}
  0x10   :  { %17 = dma.hbm_to_vmem [thread:$0]  %s206_s0, 256, %s15_s7, [#allocation3]  }
  0x11   :  { %153 = dma.done.wait [#allocation3], 256  }
  0x12   :  { %154 = vsyncadd [#allocation3], 4294967040  ;;  %v21_v0 = vld [vmem:[#allocation2] sm:$0x77]  ;;  %v22_v1 = vld [vmem:[#allocation2 + $0x8] sm:$0x77]  ;;  %v48_v8 = vlaneseq }
  0x13   :  { %v23_v2 = vmul.f32 127.5, %v21_v0  ;;  %v24_v3 = vmul.f32 127.5, %v22_v1  ;;  %vm67_vm0 = vcmask 1040384   ;;  %v158_v11 = vmov 1966171168   ;;  %s159_s0 = smov [#allocation5]  }
  0x14   :  { %v46_v12 = vunpack.c.l.s4 %v158_v11  ;;  %vm68_vm1 = vsmask.f32 512  ;;  %vm70_vm2 = vcmask 1041409   ;;  %vm71_vm3 = vsmask.f32 1536  ;;  %s91_s18 = sshll.u32 %s159_s0, 4  ;;  %s92_s18 = int_to_ptr.vmem [resolvable:$true] %s91_s18 }
  0x15   :  { %v25_v4 = vadd.f32 128.0, %v23_v2  ;;  %v26_v5 = vadd.f32 128.0, %v24_v3  ;;  %vm182_vm4 = vmand %vm67_vm0, %vm68_vm1  ;;  %v49_v19 = vshrl.u32 %v48_v8, 7  ;;  %vm74_vm6 = vcmask 1042434   ;;  %v82_v33 = vld [vmem:[#allocation5] sm:$0xf]  ;;  %p136_p9 = scmp.lt.s32.totalorder %s92_s18, %s92_s18 }
  0x16   :  { %v47_v18 = vunpack.c.0.s8 %v46_v12  ;;  %vm186_vm5 = vmand %vm70_vm2, %vm71_vm3  ;;  %vm75_vm7 = vsmask.f32 2560  ;;  %vm78_vm10 = vcmask 1043459   ;;  %vm79_vm11 = vsmask.f32 3584  ;;  %s131_s19 = scalar_lea.vmem %s92_s18, 64 }
  0x17   :  { %v27_v6 = vmax.f32 %v25_v4, 0.0  ;;  %v28_v7 = vmax.f32 %v26_v5, 0.0  ;;  %vm73_vm8 = vmor %vm186_vm5, %vm182_vm4  ;;  %p132_p8 = scmp.ne.s32.totalorder %s92_s18, %s131_s19  ;;  %p137_p10 = scmp.lt.s32.totalorder %s131_s19, %s131_s19 }
  0x18   :  { %v50_v27 = vsub.s32 %v47_v18, %v49_v19  ;;  %vm76_vm9 = vmand %vm74_vm6, %vm75_vm7 }
  0x19   :  { %v29_v9 = vmin.f32 %v27_v6, 255.0  ;;  %v30_v10 = vmin.f32 %v28_v7, 255.0  ;;  %vm77_vm12 = vmor %vm76_vm9, %vm73_vm8  ;;  %p138_p11 = por %p137_p10, %p136_p9 }
  0x1a   :  { %vm80_vm13 = vmand %vm78_vm10, %vm79_vm11 }
  0x1b   :  { %v102_v13 = vtrunc.f32 %v29_v9  ;;  %v104_v14 = vtrunc.f32 %v30_v10  ;;  %vm81_vm14 = vmor %vm80_vm13, %vm77_vm12  ;;  %p139_p12 = pnand %p138_p11, %p132_p8 }
  0x1d   :  { %v103_v16 = vcvt.f32.s32 %v102_v13  ;;  %v105_v17 = vcvt.f32.s32 %v104_v14 }
  0x1f   :  { %v33_v21 = vcombine.high %v103_v16, %v103_v16  ;;  %v34_v22 = vcombine.high %v105_v17, %v105_v17  ;;  %v35_v23 = vpack.c.b16 %v103_v16, %v103_v16  ;;  %v39_v24 = vpack.c.b16 %v105_v17, %v105_v17 }
  0x21   :  { %v37_v25 = vpack.c.b16 %v33_v21, %v33_v21  ;;  %v41_v26 = vpack.c.b16 %v34_v22, %v34_v22 }
  0x23   :  { %v100_v28 = vpack.c.b8 %v37_v25, %v35_v23  ;;  %v101_v29 = vpack.c.b8 %v41_v26, %v39_v24 }
  0x25   :  { %v51_v30 = vrot.slane %v100_v28, %v50_v27  ;;  %v58_v31 = vrot.slane %v101_v29, %v50_v27 }
  0x27   :  { %v59_v32 = vcombine.low %v51_v30, %v58_v31 }
  0x29   :  { %v66_v34 = vrot.slane %v59_v32, %v50_v27 }
  0x2b   :  { %v83_v35 = vsel %vm81_vm14, %v66_v34, %v82_v33 }
  0x2c   :  { %84 = vst [vmem:[#allocation5] sm:$0xf] %v83_v35 }
  0x2d   :  { %142 = shalt.err (!%p139_p12)
}
  0x2e   :  { %s143_s22 = scalar_lea.hbm %s207_s1, 64 }
  0x2f   :  { %p144_p13 = scmp.ne.s32.totalorder %s207_s1, %s143_s22  ;;  %p147_p0 = scmp.lt.u32.totalorder %s143_s22, %s207_s1 }
  0x31   :  { %p149_p1 = pnand %p147_p0, %p144_p13 }
  0x33   :  { %152 = shalt.err (!%p149_p1)
}
  0x34   :  { %94 = dma.vmem_to_hbm [thread:$0]  %s92_s18, 64, %s207_s1, [#allocation4]  }
  0x35   :  { %155 = dma.done.wait [#allocation4], 64  }
  0x36   :  { %156 = vsyncadd [#allocation4], 4294967232 }
  0x37   :  { %98 = vsyncpa [#allocation3], 1 }
  0x38   :  { %99 = vsyncpa [#allocation4], 1 }

</bundles_post_ra>
